<compile_context>
chip_gen: v7x
topology: tpu7x:2x2x1
jax: 0.10.0
libtpu: 0.0.40
codegen_flags: <defaults>
</compile_context>

<pallas_src>
import functools

import jax
import jax.numpy as jnp
from jax.experimental import pallas as pl
from jax.experimental.pallas import tpu as pltpu


def _box_groups(slab_ref, m_h, m_w, n_groups, cw):
    """Box-SUM of `n_groups` channel-slabs stored lane-stacked in `slab_ref`.

    slab_ref[:, g*cw:(g+1)*cw] holds group g as an (H, C*W) slab (channels folded
    into the lane axis).  H-pass: ONE (H, H) @ (H, n_groups*cw) matmul fused over
    every group and channel.  W-pass: one (H, cw) @ (cw, cw) matmul per group,
    already fused over channels because m_w is block-diagonal per channel.
    """
    t = jnp.dot(m_h, slab_ref[:, : n_groups * cw],
                preferred_element_type=jnp.float32)
    return [
        jnp.dot(t[:, g * cw:(g + 1) * cw], m_w,
                preferred_element_type=jnp.float32)
        for g in range(n_groups)
    ]


def _guided_filter_kernel(m_h_ref, m_w_ref, inv_n_ref, x_ref, y_ref, o_ref,
                          slab_ref, *, eps):
    # Constant-index inputs: DMA'd once, resident across all grid steps.  The
    # 0/1 band matrices are stored bf16 (lossless, half the VMEM/DMA); jnp.dot
    # promotes them so accumulation stays f32-accurate.
    m_h = m_h_ref[...]        # (H, H)    bf16 band
    m_w = m_w_ref[...]        # (CW, CW)  bf16 block-diag band (per-channel W pass)
    inv_n = inv_n_ref[...]    # (H, CW)   f32, 1 / box(ones)

    cw = y_ref.shape[2]       # C  * W  (channels folded into lanes)
    cxw = x_ref.shape[2]      # Cx * W

    y2 = y_ref[0].astype(jnp.float32)                    # (H, C*W)
    x2 = x_ref[0].astype(jnp.float32)                    # (H, Cx*W)
    if cxw != cw:                                        # 1-channel image:
        x2 = jnp.tile(x2, (1, cw // cxw))                # lane-tile, no HBM bcast

    # ---- phase 1: box of [x, x*x, y, x*y], lane-stacked in the scratch slab ---
    slab_ref[:, 0 * cw:1 * cw] = x2
    slab_ref[:, 1 * cw:2 * cw] = x2 * x2
    slab_ref[:, 2 * cw:3 * cw] = y2
    slab_ref[:, 3 * cw:4 * cw] = x2 * y2
    box_x, box_xx, box_y, box_xy = _box_groups(slab_ref, m_h, m_w, 4, cw)

    mean_x = box_x * inv_n
    mean_y = box_y * inv_n
    var_x = box_xx * inv_n - mean_x * mean_x
    cov_xy = box_xy * inv_n - mean_x * mean_y
    a = cov_xy / (var_x + eps)            # exact divide (precision-sensitive)
    b = mean_y - a * mean_x

    # ---- phase 2: box of [A, b] (scratch slab reused -> bounded live set) -----
    slab_ref[:, 0 * cw:1 * cw] = a
    slab_ref[:, 1 * cw:2 * cw] = b
    box_a, box_b = _box_groups(slab_ref, m_h, m_w, 2, cw)

    # Single full-block, lane-dense store (C*W lanes), no per-channel stores.
    o_ref[0] = ((box_a * inv_n) * x2 + box_b * inv_n).astype(o_ref.dtype)


def _pick_vmem_limit_bytes():
    """Per-generation VMEM budget: ~40 MiB on v7x (64 MiB phys), ~100 MiB on v5e/v6e."""
    try:
        cap = int(pltpu.get_tpu_info().vmem_capacity_bytes)
    except Exception:
        return 48 * 1024 * 1024
    if cap <= 64 * 1024 * 1024:
        return min(40 * 1024 * 1024, cap)
    return min(100 * 1024 * 1024, cap)


def guided_filter(image, guide, radius, eps=1e-8):
    """Pallas TPU GuidedFilter.forward.  image: (B, Cx, H, W), guide: (B, C, H, W)."""
    n_x, c_x, h_x, w_x = image.shape
    n_y, c_y, h_y, w_y = guide.shape
    assert n_x == n_y
    assert c_x == 1 or c_x == c_y
    assert h_x == h_y and w_x == w_y
    assert h_x > 2 * radius + 1 and w_x > 2 * radius + 1

    B, C, H, W = guide.shape
    CW = C * W
    CxW = c_x * W

    # ---- hoisted constants (built once, resident in VMEM across the grid) -----
    def band(n):
        idx = jnp.arange(n)
        return (jnp.abs(idx[:, None] - idx[None, :]) <= radius).astype(jnp.float32)

    band_h = band(H)                                     # (H, H) clipped window
    band_w = band(W)                                     # (W, W) clipped window
    # N = box(ones) = rowsum(band_h) outer rowsum(band_w); pass its reciprocal,
    # pre-tiled to the channels-in-lanes layout.
    inv_n = 1.0 / (jnp.sum(band_h, axis=1, keepdims=True) *
                   jnp.sum(band_w, axis=0, keepdims=True))           # (H, W)
    inv_n = jnp.tile(inv_n, (1, C))                                   # (H, C*W)
    # Band matrices are exactly {0,1} -> bf16 is lossless; m_w is block-diagonal
    # over the C channel blocks so one matmul does the W-pass for all channels.
    m_h = band_h.astype(jnp.bfloat16)                                 # (H, H)
    m_w = jnp.kron(jnp.eye(C, dtype=jnp.float32),
                   band_w).astype(jnp.bfloat16)                       # (CW, CW)

    # ---- channels-in-lanes layout (wrapper-side layout plumbing) --------------
    # (B, C, H, W) -> (B, H, C*W): lane axis = C*W, keeping VPU ops, matmuls and
    # the output store lane-dense even when W < 128.
    x_l = jnp.transpose(image, (0, 2, 1, 3)).reshape(B, H, CxW)
    y_l = jnp.transpose(guide, (0, 2, 1, 3)).reshape(B, H, CW)

    kernel = functools.partial(_guided_filter_kernel, eps=eps)

    out_l = pl.pallas_call(
        kernel,
        out_shape=jax.ShapeDtypeStruct((B, H, CW), image.dtype),
        grid=(B,),
        in_specs=[
            pl.BlockSpec((H, H), lambda bb: (0, 0)),           # M_H   (resident)
            pl.BlockSpec((CW, CW), lambda bb: (0, 0)),         # M_W block-diag
            pl.BlockSpec((H, CW), lambda bb: (0, 0)),          # 1/N   (resident)
            pl.BlockSpec((1, H, CxW), lambda bb: (bb, 0, 0)),  # image (no HBM bcast)
            pl.BlockSpec((1, H, CW), lambda bb: (bb, 0, 0)),   # guide
        ],
        out_specs=pl.BlockSpec((1, H, CW), lambda bb: (bb, 0, 0)),
        scratch_shapes=[pltpu.VMEM((H, 4 * CW), jnp.float32)],  # reused phase slab
        compiler_params=pltpu.CompilerParams(
            dimension_semantics=("parallel",),   # B>=2 feeds both v7x TensorCores
            vmem_limit_bytes=_pick_vmem_limit_bytes(),
        ),
    )(m_h, m_w, inv_n, x_l, y_l)

    return jnp.transpose(out_l.reshape(B, H, C, W), (0, 2, 1, 3))


# ---------------------------------------------------------------------------
# Pure-JAX reference (direct port of the cumsum-diff BoxFilter) for checking.
# ---------------------------------------------------------------------------
def _box_ref(a, r):
    H, W = a.shape[2], a.shape[3]
    c = jnp.cumsum(a, axis=2)
    a = jnp.concatenate(
        [c[:, :, r:2 * r + 1],
         c[:, :, 2 * r + 1:] - c[:, :, :H - 2 * r - 1],
         c[:, :, H - 1:] - c[:, :, H - 2 * r - 1:H - r - 1]], axis=2)
    c = jnp.cumsum(a, axis=3)
    return jnp.concatenate(
        [c[:, :, :, r:2 * r + 1],
         c[:, :, :, 2 * r + 1:] - c[:, :, :, :W - 2 * r - 1],
         c[:, :, :, W - 1:] - c[:, :, :, W - 2 * r - 1:W - r - 1]], axis=3)


def _guided_filter_ref(x, y, r, eps):
    if x.shape[1] == 1 and y.shape[1] > 1:
        x = jnp.broadcast_to(x, y.shape)
    N = _box_ref(jnp.ones((1, 1, y.shape[2], y.shape[3]), jnp.float32), r)
    mean_x = _box_ref(x, r) / N
    mean_y = _box_ref(y, r) / N
    cov_xy = _box_ref(x * y, r) / N - mean_x * mean_y
    var_x = _box_ref(x * x, r) / N - mean_x * mean_x
    A = cov_xy / (var_x + eps)
    b = mean_y - A * mean_x
    mean_A = _box_ref(A, r) / N
    mean_b = _box_ref(b, r) / N
    return mean_A * x + mean_b


if __name__ == "__main__":
    key = jax.random.PRNGKey(0)
    k1, k2, k3 = jax.random.split(key, 3)

    B, C, H, W = 2, 4, 16, 16
    radius, eps = 2, 1e-8

    image = jax.random.uniform(k1, (B, C, H, W), dtype=jnp.float32)
    guide = jax.random.uniform(k2, (B, C, H, W), dtype=jnp.float32)

    out = guided_filter(image, guide, radius, eps)
    out = jax.block_until_ready(out)
    ref = _guided_filter_ref(image, guide, radius, eps)
    assert out.shape == (B, C, H, W)
    err = float(jnp.max(jnp.abs(out - ref)))
    assert jnp.allclose(out, ref, rtol=1e-4, atol=1e-5), err

    # Channel-broadcast case: 1-channel image, C-channel guide (no HBM broadcast).
    image1 = jax.random.uniform(k3, (B, 1, H, W), dtype=jnp.float32)
    out1 = jax.block_until_ready(guided_filter(image1, guide, radius, eps))
    ref1 = _guided_filter_ref(image1, guide, radius, eps)
    err1 = float(jnp.max(jnp.abs(out1 - ref1)))
    assert jnp.allclose(out1, ref1, rtol=1e-4, atol=1e-5), err1

    print("KERNEL_OK")
</pallas_src>

<mosaic_0001>
module attributes {stable_mosaic.version = 11 : i64} {
  func.func @_guided_filter_kernel(%arg0: i32, %arg1: memref<16x16xbf16, #tpu.memory_space<vmem>>, %arg2: memref<64x64xbf16, #tpu.memory_space<vmem>>, %arg3: memref<16x64xf32, #tpu.memory_space<vmem>>, %arg4: memref<1x16x64xf32, #tpu.memory_space<vmem>>, %arg5: memref<1x16x64xf32, #tpu.memory_space<vmem>>, %arg6: memref<1x16x64xf32, #tpu.memory_space<vmem>>, %arg7: memref<16x256xf32, #tpu.memory_space<vmem>>) attributes {dimension_semantics = [#tpu.dimension_semantics<parallel>], iteration_bounds = array<i64: 2>, scalar_prefetch = 0 : i64, scratch_operands = 1 : i64, tpu.core_type = #tpu.core_type<tc>, window_params = [{pipeline_mode = #tpu.pipeline_mode<synchronous>, transform_indices = @transform_0, window_bounds = array<i64: 16, 16>}, {pipeline_mode = #tpu.pipeline_mode<synchronous>, transform_indices = @transform_1, window_bounds = array<i64: 64, 64>}, {pipeline_mode = #tpu.pipeline_mode<synchronous>, transform_indices = @transform_2, window_bounds = array<i64: 16, 64>}, {transform_indices = @transform_3, window_bounds = array<i64: 1, 16, 64>}, {transform_indices = @transform_4, window_bounds = array<i64: 1, 16, 64>}, {transform_indices = @transform_5, window_bounds = array<i64: 1, 16, 64>}]} {
    %c0 = arith.constant 0 : index
    %c0_0 = arith.constant 0 : index
    %0 = vector.load %arg1[%c0, %c0_0] : memref<16x16xbf16, #tpu.memory_space<vmem>>, vector<16x16xbf16>
    %c0_1 = arith.constant 0 : index
    %c0_2 = arith.constant 0 : index
    %1 = vector.load %arg2[%c0_1, %c0_2] : memref<64x64xbf16, #tpu.memory_space<vmem>>, vector<64x64xbf16>
    %c0_3 = arith.constant 0 : index
    %c0_4 = arith.constant 0 : index
    %2 = vector.load %arg3[%c0_3, %c0_4] : memref<16x64xf32, #tpu.memory_space<vmem>>, vector<16x64xf32>
    %c0_5 = arith.constant 0 : index
    %c0_6 = arith.constant 0 : index
    %c0_7 = arith.constant 0 : index
    %3 = vector.load %arg5[%c0_5, %c0_6, %c0_7] : memref<1x16x64xf32, #tpu.memory_space<vmem>>, vector<1x16x64xf32>
    %4 = vector.shape_cast %3 : vector<1x16x64xf32> to vector<16x64xf32>
    %c0_8 = arith.constant 0 : index
    %c0_9 = arith.constant 0 : index
    %c0_10 = arith.constant 0 : index
    %5 = vector.load %arg4[%c0_8, %c0_9, %c0_10] : memref<1x16x64xf32, #tpu.memory_space<vmem>>, vector<1x16x64xf32>
    %6 = vector.shape_cast %5 : vector<1x16x64xf32> to vector<16x64xf32>
    %c0_11 = arith.constant 0 : index
    %c0_12 = arith.constant 0 : index
    %7 = vector.load %arg7[%c0_11, %c0_12] : memref<16x256xf32, #tpu.memory_space<vmem>>, vector<16x64xf32>
    tpu.vector_store %arg7[%c0_11, %c0_12], %6 {strides = array<i32>} : memref<16x256xf32, #tpu.memory_space<vmem>>, vector<16x64xf32>,
    %8 = arith.mulf %6, %6 : vector<16x64xf32>
    %c0_13 = arith.constant 0 : index
    %c64 = arith.constant 64 : index
    %9 = vector.load %arg7[%c0_13, %c64] : memref<16x256xf32, #tpu.memory_space<vmem>>, vector<16x64xf32>
    tpu.vector_store %arg7[%c0_13, %c64], %8 {strides = array<i32>} : memref<16x256xf32, #tpu.memory_space<vmem>>, vector<16x64xf32>,
    %c0_14 = arith.constant 0 : index
    %c128 = arith.constant 128 : index
    %10 = vector.load %arg7[%c0_14, %c128] : memref<16x256xf32, #tpu.memory_space<vmem>>, vector<16x64xf32>
    tpu.vector_store %arg7[%c0_14, %c128], %4 {strides = array<i32>} : memref<16x256xf32, #tpu.memory_space<vmem>>, vector<16x64xf32>,
    %11 = arith.mulf %6, %4 : vector<16x64xf32>
    %c0_15 = arith.constant 0 : index
    %c192 = arith.constant 192 : index
    %12 = vector.load %arg7[%c0_15, %c192] : memref<16x256xf32, #tpu.memory_space<vmem>>, vector<16x64xf32>
    tpu.vector_store %arg7[%c0_15, %c192], %11 {strides = array<i32>} : memref<16x256xf32, #tpu.memory_space<vmem>>, vector<16x64xf32>,
    %c0_16 = arith.constant 0 : index
    %c0_17 = arith.constant 0 : index
    %13 = vector.load %arg7[%c0_16, %c0_17] : memref<16x256xf32, #tpu.memory_space<vmem>>, vector<16x256xf32>
    %cst = arith.constant dense<0.000000e+00> : vector<16x256xf32>
    %14 = tpu.matmul %0, %13, %cst {dimension_numbers = #tpu.dot_dimension_numbers<[1], [0], [0], [1], [0, 0, 1, 1], [], []>} : vector<16x16xbf16>, vector<16x256xf32>, vector<16x256xf32> -> vector<16x256xf32>
    %15 = vector.extract_strided_slice %14 {offsets = [0, 0], sizes = [16, 64], strides = [1, 1]} : vector<16x256xf32> to vector<16x64xf32>
    %cst_18 = arith.constant dense<0.000000e+00> : vector<16x64xf32>
    %16 = tpu.matmul %15, %1, %cst_18 {dimension_numbers = #tpu.dot_dimension_numbers<[1], [0], [0], [1], [0, 0, 1, 1], [], []>} : vector<16x64xf32>, vector<64x64xbf16>, vector<16x64xf32> -> vector<16x64xf32>
    %17 = vector.extract_strided_slice %14 {offsets = [0, 64], sizes = [16, 64], strides = [1, 1]} : vector<16x256xf32> to vector<16x64xf32>
    %cst_19 = arith.constant dense<0.000000e+00> : vector<16x64xf32>
    %18 = tpu.matmul %17, %1, %cst_19 {dimension_numbers = #tpu.dot_dimension_numbers<[1], [0], [0], [1], [0, 0, 1, 1], [], []>} : vector<16x64xf32>, vector<64x64xbf16>, vector<16x64xf32> -> vector<16x64xf32>
    %19 = vector.extract_strided_slice %14 {offsets = [0, 128], sizes = [16, 64], strides = [1, 1]} : vector<16x256xf32> to vector<16x64xf32>
    %cst_20 = arith.constant dense<0.000000e+00> : vector<16x64xf32>
    %20 = tpu.matmul %19, %1, %cst_20 {dimension_numbers = #tpu.dot_dimension_numbers<[1], [0], [0], [1], [0, 0, 1, 1], [], []>} : vector<16x64xf32>, vector<64x64xbf16>, vector<16x64xf32> -> vector<16x64xf32>
    %21 = vector.extract_strided_slice %14 {offsets = [0, 192], sizes = [16, 64], strides = [1, 1]} : vector<16x256xf32> to vector<16x64xf32>
    %cst_21 = arith.constant dense<0.000000e+00> : vector<16x64xf32>
    %22 = tpu.matmul %21, %1, %cst_21 {dimension_numbers = #tpu.dot_dimension_numbers<[1], [0], [0], [1], [0, 0, 1, 1], [], []>} : vector<16x64xf32>, vector<64x64xbf16>, vector<16x64xf32> -> vector<16x64xf32>
    %23 = arith.mulf %16, %2 : vector<16x64xf32>
    %24 = arith.mulf %20, %2 : vector<16x64xf32>
    %25 = arith.mulf %18, %2 : vector<16x64xf32>
    %26 = arith.mulf %23, %23 : vector<16x64xf32>
    %27 = arith.subf %25, %26 : vector<16x64xf32>
    %28 = arith.mulf %22, %2 : vector<16x64xf32>
    %29 = arith.mulf %23, %24 : vector<16x64xf32>
    %30 = arith.subf %28, %29 : vector<16x64xf32>
    %cst_22 = arith.constant 9.99999993E-9 : f32
    %31 = vector.broadcast %cst_22 : f32 to vector<16x64xf32>
    %32 = arith.addf %27, %31 : vector<16x64xf32>
    %33 = arith.divf %30, %32 : vector<16x64xf32>
    %34 = arith.mulf %33, %23 : vector<16x64xf32>
    %35 = arith.subf %24, %34 : vector<16x64xf32>
    %c0_23 = arith.constant 0 : index
    %c0_24 = arith.constant 0 : index
    %36 = vector.load %arg7[%c0_23, %c0_24] : memref<16x256xf32, #tpu.memory_space<vmem>>, vector<16x64xf32>
    tpu.vector_store %arg7[%c0_23, %c0_24], %33 {strides = array<i32>} : memref<16x256xf32, #tpu.memory_space<vmem>>, vector<16x64xf32>,
    %c0_25 = arith.constant 0 : index
    %c64_26 = arith.constant 64 : index
    %37 = vector.load %arg7[%c0_25, %c64_26] : memref<16x256xf32, #tpu.memory_space<vmem>>, vector<16x64xf32>
    tpu.vector_store %arg7[%c0_25, %c64_26], %35 {strides = array<i32>} : memref<16x256xf32, #tpu.memory_space<vmem>>, vector<16x64xf32>,
    %c0_27 = arith.constant 0 : index
    %c0_28 = arith.constant 0 : index
    %38 = vector.load %arg7[%c0_27, %c0_28] : memref<16x256xf32, #tpu.memory_space<vmem>>, vector<16x128xf32>
    %cst_29 = arith.constant dense<0.000000e+00> : vector<16x128xf32>
    %39 = tpu.matmul %0, %38, %cst_29 {dimension_numbers = #tpu.dot_dimension_numbers<[1], [0], [0], [1], [0, 0, 1, 1], [], []>} : vector<16x16xbf16>, vector<16x128xf32>, vector<16x128xf32> -> vector<16x128xf32>
    %40 = vector.extract_strided_slice %39 {offsets = [0, 0], sizes = [16, 64], strides = [1, 1]} : vector<16x128xf32> to vector<16x64xf32>
    %cst_30 = arith.constant dense<0.000000e+00> : vector<16x64xf32>
    %41 = tpu.matmul %40, %1, %cst_30 {dimension_numbers = #tpu.dot_dimension_numbers<[1], [0], [0], [1], [0, 0, 1, 1], [], []>} : vector<16x64xf32>, vector<64x64xbf16>, vector<16x64xf32> -> vector<16x64xf32>
    %42 = vector.extract_strided_slice %39 {offsets = [0, 64], sizes = [16, 64], strides = [1, 1]} : vector<16x128xf32> to vector<16x64xf32>
    %cst_31 = arith.constant dense<0.000000e+00> : vector<16x64xf32>
    %43 = tpu.matmul %42, %1, %cst_31 {dimension_numbers = #tpu.dot_dimension_numbers<[1], [0], [0], [1], [0, 0, 1, 1], [], []>} : vector<16x64xf32>, vector<64x64xbf16>, vector<16x64xf32> -> vector<16x64xf32>
    %44 = arith.mulf %41, %2 : vector<16x64xf32>
    %45 = arith.mulf %44, %6 : vector<16x64xf32>
    %46 = arith.mulf %43, %2 : vector<16x64xf32>
    %47 = arith.addf %45, %46 : vector<16x64xf32>
    %c0_32 = arith.constant 0 : index
    %c0_33 = arith.constant 0 : index
    %c0_34 = arith.constant 0 : index
    %48 = vector.load %arg6[%c0_32, %c0_33, %c0_34] : memref<1x16x64xf32, #tpu.memory_space<vmem>>, vector<1x16x64xf32>
    %49 = vector.shape_cast %48 : vector<1x16x64xf32> to vector<16x64xf32>
    %50 = vector.shape_cast %47 : vector<16x64xf32> to vector<1x16x64xf32>
    tpu.vector_store %arg6[%c0_32, %c0_33, %c0_34], %50 {strides = array<i32>} : memref<1x16x64xf32, #tpu.memory_space<vmem>>, vector<1x16x64xf32>,
    return
  }
  func.func @transform_0(%arg0: i32) -> (i32, i32) {
    %c0_i32 = arith.constant 0 : i32
    %c0_i32_0 = arith.constant 0 : i32
    %c0_i32_1 = arith.constant 0 : i32
    return %c0_i32, %c0_i32_0 : i32, i32
  }
  func.func @transform_1(%arg0: i32) -> (i32, i32) {
    %c0_i32 = arith.constant 0 : i32
    %c0_i32_0 = arith.constant 0 : i32
    %c0_i32_1 = arith.constant 0 : i32
    return %c0_i32, %c0_i32_0 : i32, i32
  }
  func.func @transform_2(%arg0: i32) -> (i32, i32) {
    %c0_i32 = arith.constant 0 : i32
    %c0_i32_0 = arith.constant 0 : i32
    %c0_i32_1 = arith.constant 0 : i32
    return %c0_i32, %c0_i32_0 : i32, i32
  }
  func.func @transform_3(%arg0: i32) -> (i32, i32, i32) {
    %c0_i32 = arith.constant 0 : i32
    %c0_i32_0 = arith.constant 0 : i32
    %c0_i32_1 = arith.constant 0 : i32
    return %arg0, %c0_i32, %c0_i32_0 : i32, i32, i32
  }
  func.func @transform_4(%arg0: i32) -> (i32, i32, i32) {
    %c0_i32 = arith.constant 0 : i32
    %c0_i32_0 = arith.constant 0 : i32
    %c0_i32_1 = arith.constant 0 : i32
    return %arg0, %c0_i32, %c0_i32_0 : i32, i32, i32
  }
  func.func @transform_5(%arg0: i32) -> (i32, i32, i32) {
    %c0_i32 = arith.constant 0 : i32
    %c0_i32_0 = arith.constant 0 : i32
    %c0_i32_1 = arith.constant 0 : i32
    return %arg0, %c0_i32, %c0_i32_0 : i32, i32, i32
  }
}

</mosaic_0001>

<bundles_post_ra>
// kernel: tpu_custom_call.1
= control target key start
LH: loop header
LB: loop body
LE: loop exit
PB: predicated region body
PF: predicated region fallthrough
CT: control target
= control target key end

     0   :  { %s2007_s0 = inlined_call_operand.hbm [shape: bf16[16,16], index: 0, kind: input, shape index: {}]   ;;  %s2008_s1 = inlined_call_operand.hbm [shape: bf16[64,64], index: 1, kind: input, shape index: {}]   ;;  %s2009_s2 = inlined_call_operand.hbm [shape: f32[16,64], index: 2, kind: input, shape index: {}]   ;;  %s2010_s3 = inlined_call_operand.hbm [shape: f32[2,16,64], index: 3, kind: input, shape index: {}]   ;;  %s2011_s4 = inlined_call_operand.hbm [shape: f32[2,16,64], index: 4, kind: input, shape index: {}]   ;;  %s2012_s5 = inlined_call_operand.hbm [shape: f32[2,16,64], index: 5, kind: output, shape index: {}]  }
   0x1   :  { %2030 = sst [smem:[#allocation21_spill]] %s2008_s1 }
   0x2   :  { %2031 = sst [smem:[#allocation22_spill]] %s2010_s3 }
   0x3   :  { %10 = vsyncpa [#allocation4], 0 }
   0x4   :  { %11 = vsyncpa [#allocation7], 0 }
   0x5   :  { %12 = vsyncpa [#allocation10], 0 }
   0x6   :  { %14 = vsyncpa [#allocation10 + $0x1], 0 }
   0x7   :  { %15 = vsyncpa [#allocation5], 0 }
   0x8   :  { %17 = vsyncpa [#allocation5 + $0x1], 0  ;;  %s1579_s18 = smov 0   ;;  %s1581_s19 = smov 0  }
   0x9   :  { %s1583_s20 = smov 0   ;;  %s1585_s21 = smov 0  }
   0xa LB: > { %2032 = sst [smem:[#allocation17_spill]] %s1526_s20  ;;  %s1600_s22 = sadd.s32 4294967295, %s1530_s21   ;;  %s1530_s21 = sphi %s1585_s21, %s2063_s21   ;;  %s1526_s20 = sphi %s1583_s20, %s2065_s20   ;;  %s1522_s19 = sphi %s1581_s19, %s2067_s19   ;;  %s1518_s18 = sphi %s1579_s18, %s2066_s18  }
   0xb   : > { %2033 = sst [smem:[#allocation18_spill]] %s1530_s21  ;;  %s1044_s23 = sadd.s32 4294967294, %s1530_s21  }
   0xc   : > { %p106_p0 = scmp.ne.s32.totalorder %s1522_s19, %s1518_s18  ;;  %p2013_p1 = scmp.eq.s32.totalorder %s1600_s22, 0 }
   0xd   : > { %p162_p3 = scmp.eq.s32.totalorder %s1044_s23, 1  ;;  %p1045_p5 = scmp.ge.s32.totalorder %s1530_s21, 1 }
   0xe   : > { %p1609_p4 = por %p2013_p1, %p106_p0  ;;  %p169_p7 = scmp.lt.s32.totalorder %s1530_s21, 3 }
   0xf   : > { %p1614_p6 = por %p162_p3, %p106_p0  ;;  %s1532_s27 = smov [#allocation6]  }
  0x10   : > { %s2034_s24 = scalar_select %p1609_p4, 1, 0 }
  0x11   : > { %s2035_s25 = scalar_select %p1614_p6, 1, 0 }
  0x12   : > { %p1619_p8 = pnand %p1045_p5, %p169_p7  ;;  %s194_s28 = sshll.u32 %s1532_s27, 4  ;;  %s195_s28 = int_to_ptr.vmem [resolvable:$true] %s194_s28 }
  0x13   : > { %s1633_s30 = sadd.s32 1, %s1530_s21   ;;  %s93_s6 = sadd.s32 1, %s1526_s20 }
  0x14   : > { %s2036_s26 = scalar_select %p1619_p8, 1, 0 }
  0x15   : > { %p1228_p10 = pneg %p1619_p8  ;;  %2038 = sst [smem:[#allocation19_spill]] %s1633_s30 }
  0x16   : > { %s90_s7 = ssub.s32 %s1530_s21, %s1633_s30  ;;  %s2039_s1 = sld [smem:[#allocation21_spill]] }
  0x17   : > { %p1628_p11 = pnand %p1228_p10, %p2013_p1 }
  0x19   : > { %s2037_s29 = scalar_select %p1628_p11, 1, 0 }
  0x1a   : > { %p1646_p13 = pneg %p1628_p11 }
  0x1c   : > { %s1312_s10 = scalar_lea.hbm %s2039_s1, 512 }
  0x1d   : > { %p1313_p12 = scmp.ne.s32.totalorder %s2039_s1, %s1312_s10  ;;  %p1319_p5 = scmp.lt.u32.totalorder %s1312_s10, %s2039_s1 }
  0x1f   : > { %p1315_p0 = pnand %p1646_p13, %p1313_p12 }
  0x21   : > { %p1316_p3 = pneg %p1315_p0 }
  0x23   : > { %p1321_p7 = pnand %p1319_p5, %p1316_p3 }
  0x25   : > { %1324 = shalt.err (!%p1321_p7)
}
  0x26   : > { %s1325_s16 = scalar_lea.vmem %s195_s28, 512  ;;  %p1333_p2 = scmp.lt.s32.totalorder %s195_s28, %s195_s28 }
  0x27   : > { %p1326_p10 = scmp.ne.s32.totalorder %s195_s28, %s1325_s16  ;;  %p1334_p6 = scmp.lt.s32.totalorder %s1325_s16, %s1325_s16 }
  0x29   : > { %p1328_p9 = pnand %p1326_p10, %p1646_p13  ;;  %p1335_p4 = por %p1334_p6, %p1333_p2 }
  0x2b   : > { %p1329_p1 = pneg %p1328_p9 }
  0x2d   : > { %p1336_p8 = pnand %p1335_p4, %p1329_p1 }
  0x2f   : > { %1339 = shalt.err (!%p1336_p8)
}
  0x30   : > { %s2018_s17 = smov 64   ;;  %s2019_s23 = smov 4  }
  0x31   : > { %1234 = dma.hbm_to_vmem [thread:$0]  (!%p1628_p11), %s2039_s1, 512, %s195_s28, [#allocation7], %s2018_s17, %s2018_s17, %s2019_s23  }
  0x32   : > { %p91_p1 = scmp.eq.s32.totalorder %s90_s7, 0  ;;  %p100_p2 = scmp.ne.s32.totalorder %s1526_s20, %s1522_s19 }
  0x33   : > { %p101_p4 = scmp.eq.s32.totalorder %s1530_s21, 0  ;;  %p2042_p8 = scmp.eq.s32.totalorder %s1600_s22, 1 }
  0x34   : > { %s1669_s9 = scalar_select %p91_p1, %s1526_s20, %s93_s6  }
  0x35   : > { %p102_p6 = por %p101_p4, %p100_p2  ;;  %p1673_p9 = por %p2042_p8, %p100_p2 }
  0x36   : > { %2041 = sst [smem:[#allocation20_spill]] %s1669_s9  ;;  %p1252_p12 = scmp.lt.s32.totalorder %s1530_s21, 2 }
  0x37   : > { %s2043_s10 = scalar_select %p1673_p9, 1, 0 }
  0x38   : > { %s221_s11 = sand.u32 1, %s1530_s21   ;;  %s223_s12 = sand.u32 1, %s1526_s20  }
  0x39   : > { %s1050_s14 = sshll.u32 %s223_s12, 4  ;;  %s1087_s15 = sshll.u32 %s1530_s21, 8 }
  0x3a   : > { %s2044_s3 = sld [smem:[#allocation22_spill]]  ;;  %s225_s6 = scalar_lea.vmem [#allocation9], %s1050_s14 }
  0x3b   : > { %s232_s7 = sshll.u32 %s225_s6, 4  ;;  %p1688_p0 = pnand %p1252_p12, %p102_p6  ;;  %s1686_s7 = int_to_ptr.vmem [resolvable:$true] %s232_s7 }
  0x3c   : > { %s1695_s30 = scalar_lea.hbm %s2011_s4, %s1087_s15  ;;  %s246_s16 = scalar_lea.vmem [#allocation11], %s1050_s14 }
  0x3d   : > { %s2045_s27 = scalar_select %p1688_p0, 1, 0 }
  0x3e   : > { %s1697_s17 = sshll.u32 %s246_s16, 4  ;;  %s1699_s23 = scalar_lea.sflag [#allocation10], %s221_s11  ;;  %s1731_s17 = int_to_ptr.vmem [resolvable:$true] %s1697_s17 }
  0x3f   : > { %p2025_p5 = pneg %p1688_p0 }
  0x40   : > { %s1684_s28 = scalar_lea.hbm %s2044_s3, %s1087_s15  ;;  %s1345_s8 = scalar_lea.hbm %s2044_s3, 512 }
  0x41   : > { %s1340_s6 = scalar_lea.hbm %s1684_s28, 256  ;;  %p1346_p1 = scmp.lt.u32.totalorder %s1684_s28, %s2044_s3 }
  0x42   : > { %p1341_p3 = scmp.ne.s32.totalorder %s1684_s28, %s1340_s6  ;;  %p1347_p2 = scmp.lt.u32.totalorder %s1345_s8, %s1340_s6 }
  0x43   : > { %p1349_p6 = scmp.lt.u32.totalorder %s1340_s6, %s1684_s28 }
  0x44   : > { %p1343_p7 = pnand %p2025_p5, %p1341_p3  ;;  %p1348_p4 = por %p1347_p2, %p1346_p1 }
  0x46   : > { %p1344_p10 = pneg %p1343_p7  ;;  %p1350_p8 = por %p1349_p6, %p1348_p4 }
  0x48   : > { %p1351_p12 = pnand %p1350_p8, %p1344_p10 }
  0x4a   : > { %1354 = shalt.err (!%p1351_p12)
}
  0x4b   : > { %s1355_s11 = scalar_lea.vmem %s1686_s7, 256  ;;  %s1535_s1 = smov [#allocation9]  }
  0x4c   : > { %p1356_p3 = scmp.ne.s32.totalorder %s1686_s7, %s1355_s11  ;;  %s1360_s9 = sshll.u32 %s1535_s1, 4  ;;  %s1361_s9 = int_to_ptr.vmem [resolvable:$false] %s1360_s9 }
  0x4d   : > { %s1362_s14 = scalar_lea.vmem %s1361_s9, 512  ;;  %p1363_p11 = scmp.lt.s32.totalorder %s1686_s7, %s1361_s9 }
  0x4e   : > { %p1358_p7 = pnand %p1356_p3, %p2025_p5  ;;  %p1364_p1 = scmp.lt.s32.totalorder %s1362_s14, %s1355_s11 }
  0x50   : > { %p1359_p9 = pneg %p1358_p7  ;;  %p1365_p2 = por %p1364_p1, %p1363_p11 }
  0x52   : > { %p1366_p4 = pnand %p1365_p2, %p1359_p9 }
  0x54   : > { %1369 = shalt.err (!%p1366_p4)
}
  0x55   : > { %s2026_s16 = smov 128   ;;  %s1537_s6 = smov 8  }
  0x56   : > { %1241 = dma.hbm_to_vmem [thread:$0]  (!%p1688_p0), %s1684_s28, 256, %s1686_s7, %s1699_s23, %s2026_s16, %s2026_s16, %s1537_s6  }
  0x57   : > { %s1538_s8 = smov [#allocation3]   ;;  %s1539_s15 = smov [#allocation8]  }
  0x58   : > { %s181_s12 = sshll.u32 %s1538_s8, 4  ;;  %s207_s11 = sshll.u32 %s1539_s15, 4  ;;  %s182_s12 = int_to_ptr.vmem [resolvable:$true] %s181_s12  ;;  %s208_s11 = int_to_ptr.vmem [resolvable:$true] %s207_s11 }
  0x59   : > { %s1370_s14 = scalar_lea.hbm %s2007_s0, 128 }
  0x5a   : > { %p1371_p11 = scmp.ne.s32.totalorder %s2007_s0, %s1370_s14  ;;  %p1377_p6 = scmp.lt.u32.totalorder %s1370_s14, %s2007_s0 }
  0x5c   : > { %p1373_p9 = pnand %p1371_p11, %p1646_p13 }
  0x5e   : > { %p1374_p10 = pneg %p1373_p9 }
  0x60   : > { %p1379_p8 = pnand %p1377_p6, %p1374_p10 }
  0x62   : > { %1382 = shalt.err (!%p1379_p8)
}
  0x63   : > { %s1383_s7 = scalar_lea.vmem %s182_s12, 128  ;;  %p1391_p1 = scmp.lt.s32.totalorder %s182_s12, %s182_s12 }
  0x64   : > { %p1384_p12 = scmp.ne.s32.totalorder %s182_s12, %s1383_s7  ;;  %p1392_p2 = scmp.lt.s32.totalorder %s1383_s7, %s1383_s7 }
  0x66   : > { %p1386_p3 = pnand %p1384_p12, %p1646_p13  ;;  %p1393_p4 = por %p1392_p2, %p1391_p1 }
  0x68   : > { %p1387_p7 = pneg %p1386_p3 }
  0x6a   : > { %p1394_p5 = pnand %p1393_p4, %p1387_p7 }
  0x6c   : > { %1397 = shalt.err (!%p1394_p5)
}
  0x6d   : > { %p2046_p11 = scmp.ne.s32.totalorder %s2037_s29, 0  ;;  %s2047_s3 = smov 4  }
  0x6e   : > { %s2048_s20 = smov 64   ;;  %s1398_s9 = scalar_lea.hbm %s2009_s2, 256 }
  0x6f   : > { %1231 = dma.hbm_to_vmem [thread:$0]  (!%p2046_p11), %s2007_s0, 128, %s182_s12, [#allocation4], %s2048_s20, %s2048_s20, %s2047_s3  }
  0x70   : > { %p1399_p9 = scmp.ne.s32.totalorder %s2009_s2, %s1398_s9  ;;  %p1405_p6 = scmp.lt.u32.totalorder %s1398_s9, %s2009_s2 }
  0x72   : > { %p1401_p5 = pnand %p1399_p9, %p1646_p13 }
  0x74   : > { %p1402_p10 = pneg %p1401_p5 }
  0x76   : > { %p1407_p8 = pnand %p1405_p6, %p1402_p10 }
  0x78   : > { %1410 = shalt.err (!%p1407_p8)
}
  0x79   : > { %s1411_s21 = scalar_lea.vmem %s208_s11, 256  ;;  %p1419_p1 = scmp.lt.s32.totalorder %s208_s11, %s208_s11 }
  0x7a   : > { %p1412_p12 = scmp.ne.s32.totalorder %s208_s11, %s1411_s21  ;;  %p1420_p2 = scmp.lt.s32.totalorder %s1411_s21, %s1411_s21 }
  0x7c   : > { %p1414_p3 = pnand %p1412_p12, %p1646_p13  ;;  %p1421_p4 = por %p1420_p2, %p1419_p1 }
  0x7e   : > { %p1415_p7 = pneg %p1414_p3 }
  0x80   : > { %p1422_p0 = pnand %p1421_p4, %p1415_p7 }
  0x82   : > { %1425 = shalt.err (!%p1422_p0)
}
  0x83   : > { %s2049_s12 = smov 128   ;;  %s1426_s13 = scalar_lea.hbm %s1695_s30, 256 }
  0x84   : > { %1237 = dma.hbm_to_vmem [thread:$0]  (!%p2046_p11), %s2009_s2, 256, %s208_s11, [#allocation7], %s2049_s12, %s2049_s12, %s1537_s6  }
  0x85   : > { %p1427_p13 = scmp.ne.s32.totalorder %s1695_s30, %s1426_s13  ;;  %p2050_p9 = scmp.ne.s32.totalorder %s2045_s27, 0 }
  0x86   : > { %s1431_s8 = scalar_lea.hbm %s2011_s4, 512  ;;  %p1432_p6 = scmp.lt.u32.totalorder %s1695_s30, %s2011_s4 }
  0x87   : > { %p2051_p5 = pneg %p2050_p9  ;;  %p1433_p8 = scmp.lt.u32.totalorder %s1431_s8, %s1426_s13 }
  0x88   : > { %p1435_p3 = scmp.lt.u32.totalorder %s1426_s13, %s1695_s30 }
  0x89   : > { %p1429_p10 = pnand %p1427_p13, %p2051_p5  ;;  %p1434_p12 = por %p1433_p8, %p1432_p6 }
  0x8b   : > { %p1430_p0 = pneg %p1429_p10  ;;  %p1436_p7 = por %p1435_p3, %p1434_p12 }
  0x8d   : > { %p1437_p1 = pnand %p1436_p7, %p1430_p0 }
  0x8f   : > { %1440 = shalt.err (!%p1437_p1)
}
  0x90   : > { %s1441_s11 = scalar_lea.vmem %s1731_s17, 256  ;;  %p2052_p2 = pmov %p2051_p5 }
  0x91   : > { %p1442_p11 = scmp.ne.s32.totalorder %s1731_s17, %s1441_s11  ;;  %s1540_s9 = smov [#allocation11]  }
  0x92   : > { %s1446_s14 = sshll.u32 %s1540_s9, 4  ;;  %s1447_s14 = int_to_ptr.vmem [resolvable:$false] %s1446_s14 }
  0x93   : > { %p1444_p4 = pnand %p1442_p11, %p2052_p2  ;;  %s1448_s28 = scalar_lea.vmem %s1447_s14, 512 }
  0x94   : > { %p1449_p5 = scmp.lt.s32.totalorder %s1731_s17, %s1447_s14  ;;  %p1450_p10 = scmp.lt.s32.totalorder %s1448_s28, %s1441_s11 }
  0x95   : > { %p1445_p13 = pneg %p1444_p4 }
  0x96   : > { %p1451_p6 = por %p1450_p10, %p1449_p5 }
  0x98   : > { %p1452_p8 = pnand %p1451_p6, %p1445_p13 }
  0x9a   : > { %1455 = shalt.err (!%p1452_p8)
}
  0x9b   : > { %1244 = dma.hbm_to_vmem [thread:$0]  (!%p2050_p9), %s1695_s30, 256, %s1731_s17, %s1699_s23, %s2049_s12, %s2049_s12, %s1537_s6  }
  0x9c   : > { %p2053_p0 = scmp.ne.s32.totalorder %s2036_s26, 0 }
  0x9d   : > { %p2054_p12 = scmp.eq.s32.totalorder (!%p2053_p0), %s1600_s22, 0 }
  0x9e   : > { %265 = sbr.rel (%p2053_p0) target bundleno = 1569 (0x621), region = 40 }
  0xa5   : > { %1501 = dma.done.wait (%p2054_p12), [#allocation4], 128   ;;  %p2055_p3 = pmov %p2054_p12 }
  0xa7   : > { %1503 = vsyncadd (%p2055_p3), [#allocation4], 4294967168  ;;  %p2056_p7 = pmov %p2055_p3 }
  0xa8   : > { %p2057_p1 = pmov %p2055_p3 }
  0xa9   : > { %1505 = dma.done.wait (%p2056_p7), [#allocation7], 768  }
  0xaa   : > { %1507 = vsyncadd (%p2057_p1), [#allocation7], 4294966528  ;;  %s279_s17 = sand.u32 1, %s1600_s22   ;;  %s281_s23 = sand.u32 1, %s1522_s19  }
  0xab   : > { %s1816_s26 = sshll.u32 %s281_s23, 4  ;;  %s280_s27 = scalar_lea.sflag [#allocation10], %s279_s17 }
  0xac   : > { %s283_s30 = scalar_lea.vmem [#allocation9], %s1816_s26  ;;  %p2058_p9 = scmp.ne.s32.totalorder %s2034_s24, 0 }
  0xae   : > { %1509 = dma.done.wait (%p2058_p9), %s280_s27, 512  }
  0xaf   : > { %1511 = vsyncadd (%p2058_p9), %s280_s27, 4294966784  ;;  %vm341_vm0 = vcmask 523264   ;;  %v1823_v0 = vld [vmem:[%s283_s30] sm:$0xff]  ;;  %s292_s6 = scalar_lea.vmem [#allocation11], %s1816_s26  ;;  %v1833_v5 = vld [vmem:[%s283_s30 + $0x8] sm:$0xff]  ;;  %s1541_s24 = smov 64  }
  0xb0   : > { %v337_v1 = vld [vmem:[%s292_s6] sm:$0xff]  ;;  %v338_v2 = vld [vmem:[%s292_s6 + $0x8] sm:$0xff]  ;;  %v344_v3 = vmul.f32 %v1823_v0, %v1823_v0  ;;  %342 = vst.msk [vmem:[#allocation2] sm:$0xff] %vm341_vm0, %v1823_v0  ;;  %343 = vst.msk [vmem:[#allocation2 + $0x10] sm:$0xff] %vm341_vm0, %v1833_v5  ;;  %v345_v6 = vmul.f32 %v1833_v5, %v1833_v5  ;;  %v1542_v8 = vmov 0   ;;  %vm354_vm1 = vcmask 1048064  }
  0xb1   : > { %358 = vst.msk [vmem:[#allocation2 + $0x18] sm:$0xff] %vm341_vm0, %v338_v2  ;;  %v359_v4 = vmul.f32 %v1823_v0, %v337_v1  ;;  %357 = vst.msk [vmem:[#allocation2 + $0x8] sm:$0xff] %vm341_vm0, %v337_v1  ;;  %v360_v7 = vmul.f32 %v1833_v5, %v338_v2  ;;  %448 = vmatprep.mubr.bf16.mxu0 %v1542_v8  ;;  %v1844_v9 = vld [vmem:[#allocation6] sm:$0xff]   ;;  %v1846_v10 = vld [vmem:[#allocation6 + $0x8] sm:$0xff]   ;;  %vm380_vm2 = vcmask 130048   ;;  %v1543_v55 = vmov 0.0|0.0  }
  0xb2   : > { %348 = vrot.lane.b32.xlu1 %v344_v3, %s1541_s24  ;;  %1129 = vmatprep.subr.bf16.mxu1 %v1844_v9  ;;  %v1851_v11 = vld [vmem:[#allocation6 + $0x10] sm:$0xff]   ;;  %v1855_v12 = vld [vmem:[#allocation6 + $0x18] sm:$0xff]   ;;  %v1912_v34 = vld [vmem:[#allocation8 + $0x8] sm:$0xff]  ;;  %vm1544_vm3 = vmmov 0   ;;  %s1089_s7 = sshll.u32 %s1600_s22, 8  ;;  %s323_s21 = scalar_lea.vmem [#allocation12], %s1816_s26 }
  0xb3   : > { %363 = vrot.lane.b32.xlu0 %v359_v4, %s1541_s24  ;;  %1130 = vmatpush3.bf16.msra.mxu1 %v1844_v9  ;;  %v1865_v23 = vld [vmem:[#allocation3] sm:$0xff]   ;;  %v1914_v35 = vld [vmem:[#allocation8] sm:$0xff]  ;;  %s920_s12 = sshll.u32 %s323_s21, 4  ;;  %s1957_s13 = scalar_lea.hbm %s2012_s5, %s1089_s7  ;;  %s1959_s12 = int_to_ptr.vmem [resolvable:$true] %s920_s12 }
  0xb4   : > { %1131 = vmatprep.subr.bf16.mxu1 %v1846_v10  ;;  %s1965_s22 = scalar_lea.sflag [#allocation5], %s281_s23  ;;  %s1456_s20 = scalar_lea.vmem %s1959_s12, 256 }
  0xb5   : > { %p1457_p11 = scmp.ne.s32.totalorder %s1959_s12, %s1456_s20  ;;  %p2059_p2 = scmp.ne.s32.totalorder %s2043_s10, 0 }
  0xb6   : > { %350 = vrot.lane.b32.xlu1 %v345_v6, %s1541_s24  ;;  %s1546_s29 = smov [#allocation12]  }
  0xb7   : > { %365 = vrot.lane.b32.xlu0 %v360_v7, %s1541_s24  ;;  %1132 = vmatpush3.bf16.msra.mxu1 %v1846_v10  ;;  %v1545_v7 = vmov 0.0   ;;  %p1458_p4 = pnand %p1457_p11, %p2059_p2  ;;  %s1460_s8 = sshll.u32 %s1546_s29, 4  ;;  %s1461_s8 = int_to_ptr.vmem [resolvable:$false] %s1460_s8 }
  0xb8   : > { %1133 = vmatprep.subr.bf16.mxu1 %v1851_v11  ;;  %s1462_s15 = scalar_lea.vmem %s1461_s8, 512  ;;  %p1463_p5 = scmp.lt.s32.totalorder %s1959_s12, %s1461_s8 }
  0xb9   : > { %p1459_p13 = pneg %p1458_p4  ;;  %p1464_p10 = scmp.lt.s32.totalorder %s1462_s15, %s1456_s20 }
  0xbb   : > { %1134 = vmatpush3.bf16.msra.mxu1 %v1851_v11  ;;  %p1465_p6 = por %p1464_p10, %p1463_p5 }
  0xbc   : > { %1135 = vmatprep.subr.bf16.mxu1 %v1855_v12 }
  0xbd   : > { %p1466_p8 = pnand %p1465_p6, %p1459_p13 }
  0xbf   : > { %1136 = vmatpush3.bf16.msra.mxu1 %v1855_v12 }
  0xc0   : > { %1151 = vmatprep.subr.bf16.mxu1 %v1844_v9 }
 0x124   : > { %v349_v13 = vpop.permute.xlu1 %348 }
 0x125   : > { %v364_v14 = vpop.permute.xlu0 %363  ;;  %355 = vst.msk [vmem:[#allocation2] sm:$0xff] %vm354_vm1, %v349_v13 }
 0x126   : > { %369 = vst.msk [vmem:[#allocation2 + $0x8] sm:$0xff] %vm354_vm1, %v364_v14 }
 0x128   : > { %v351_v15 = vpop.permute.xlu1 %350 }
 0x129   : > { %v366_v16 = vpop.permute.xlu0 %365  ;;  %356 = vst.msk [vmem:[#allocation2 + $0x10] sm:$0xff] %vm354_vm1, %v351_v15 }
 0x12a   : > { %370 = vst.msk [vmem:[#allocation2 + $0x18] sm:$0xff] %vm354_vm1, %v366_v16 }
 0x12c   : > { %v371_v19 = vld [vmem:[#allocation2] sm:$0xff] }
 0x12d   : > { %v372_v17 = vld [vmem:[#allocation2 + $0x8] sm:$0xff] }
 0x130   : > { %v373_v20 = vld [vmem:[#allocation2 + $0x10] sm:$0xff] }
 0x131   : > { %v374_v18 = vld [vmem:[#allocation2 + $0x18] sm:$0xff]  ;;  %v1205_v22 = vpack.c.bf16 %v373_v20, %v371_v19 }
 0x132   : > { %v1203_v21 = vpack.c.bf16 %v374_v18, %v372_v17 }
 0x134   : > { %1204 = vmatprep.subr.bf16.mxu0 %v1203_v21 }
 0x135   : > { %1206 = vmatpush1.bf16.msra.mxu0 %v1205_v22 }
 0x136   : > { %1140 = vmatprep.subr.bf16.mxu0 %v1844_v9 }
 0x138   : > { %1064 = vmatmul.mubr.msk.bf16.vlgmr.msra.gmra.mrb[0].mxu0 %vm380_vm2, %v1865_v23 }
 0x139   : > { %1141 = vmatpush3.bf16.msra.mxu0 %v1844_v9 }
 0x13a   : > { %1142 = vmatprep.subr.bf16.mxu0 %v1846_v10 }
 0x13d   : > { %1143 = vmatpush3.bf16.msra.mxu0 %v1846_v10 }
 0x13e   : > { %1144 = vmatprep.subr.bf16.mxu0 %v1851_v11 }
 0x141   : > { %1145 = vmatpush3.bf16.msra.mxu0 %v1851_v11 }
 0x142   : > { %1146 = vmatprep.subr.bf16.mxu0 %v1855_v12 }
 0x145   : > { %1147 = vmatpush3.bf16.msra.mxu0 %v1855_v12 }
 0x146   : > { %1162 = vmatprep.subr.bf16.mxu0 %v1844_v9 }
 0x20b   : > { %v450_v24 = vpop.f32.mrb[0].mxu0 }
 0x20c   : > { %532 = vrot.lane.b32.xlu0 %v450_v24, %s1541_s24  ;;  %v452_v25 = vpop.f32.mrb[1].mxu0  ;;  %1137 = vmatprep.mubr.msk.f32.mxu1 %vm341_vm0, %v450_v24 }
 0x20d   : > { %v454_v26 = vpop.f32.mrb[2].mxu0 }
 0x20e   : > { %534 = vrot.lane.b32.xlu1 %v454_v26, %s1541_s24  ;;  %v456_v27 = vpop.f32.mrb[3].mxu0  ;;  %1138 = vmatmul.mubr.msk.f32.vlgmr.msra.gmra.mrb[0].mxu1 %vm341_vm0, %v454_v26 }
 0x20f   : > { %1152 = vmatpush3.bf16.msra.mxu1 %v1844_v9  ;;  %1159 = vmatprep.mubr.msk.f32.mxu1 %vm341_vm0, %v452_v25 }
 0x210   : > { %632 = vrot.lane.b32.xlu0 %v452_v25, %s1541_s24  ;;  %1153 = vmatprep.subr.bf16.mxu1 %v1846_v10 }
 0x212   : > { %634 = vrot.lane.b32.xlu1 %v456_v27, %s1541_s24 }
 0x213   : > { %1154 = vmatpush3.bf16.msra.mxu1 %v1846_v10 }
 0x214   : > { %1155 = vmatprep.subr.bf16.mxu1 %v1851_v11 }
 0x217   : > { %1156 = vmatpush3.bf16.msra.mxu1 %v1851_v11 }
 0x218   : > { %1157 = vmatprep.subr.bf16.mxu1 %v1855_v12 }
 0x21b   : > { %1158 = vmatpush3.bf16.msra.mxu1 %v1855_v12 }
 0x21c   : > { %1207 = vmatprep.subr.bf16.mxu1 %v1543_v55 }
 0x21e   : > { %1160 = vmatmul.mubr.msk.f32.vlgmr.msra.gmra.mrb[2].mxu1 %vm341_vm0, %v456_v27 }
 0x21f   : > { %1177 = vmatprep.mubr.msk.bf16.mxu1 %vm1544_vm3, %v1545_v7 }
 0x27e   : > { %v533_v28 = vpop.permute.xlu0 %532 }
 0x27f   : > { %1148 = vmatprep.mubr.msk.f32.mxu0 %vm341_vm0, %v533_v28 }
 0x280   : > { %v535_v29 = vpop.permute.xlu1 %534 }
 0x281   : > { %1149 = vmatmul.mubr.msk.f32.vlgmr.msra.gmra.mrb[4].mxu0 %vm341_vm0, %v535_v29 }
 0x282   : > { %1163 = vmatpush3.bf16.msra.mxu0 %v1844_v9  ;;  %v633_v30 = vpop.permute.xlu0 %632 }
 0x283   : > { %1170 = vmatprep.mubr.msk.f32.mxu0 %vm341_vm0, %v633_v30  ;;  %1164 = vmatprep.subr.bf16.mxu0 %v1846_v10 }
 0x284   : > { %v635_v31 = vpop.permute.xlu1 %634 }
 0x286   : > { %1165 = vmatpush3.bf16.msra.mxu0 %v1846_v10 }
 0x287   : > { %1166 = vmatprep.subr.bf16.mxu0 %v1851_v11 }
 0x28a   : > { %1167 = vmatpush3.bf16.msra.mxu0 %v1851_v11 }
 0x28b   : > { %1168 = vmatprep.subr.bf16.mxu0 %v1855_v12 }
 0x28e   : > { %1169 = vmatpush3.bf16.msra.mxu0 %v1855_v12 }
 0x28f   : > { %1181 = vmatprep.subr.bf16.mxu0 %v1844_v9 }
 0x291   : > { %1171 = vmatmul.mubr.msk.f32.vlgmr.msra.gmra.mrb[6].mxu0 %vm341_vm0, %v635_v31 }
 0x292   : > { %1182 = vmatpush3.bf16.msra.mxu0 %v1844_v9 }
 0x293   : > { %1183 = vmatprep.subr.bf16.mxu0 %v1846_v10 }
 0x296   : > { %1184 = vmatpush3.bf16.msra.mxu0 %v1846_v10 }
 0x297   : > { %1185 = vmatprep.subr.bf16.mxu0 %v1851_v11 }
 0x29a   : > { %1186 = vmatpush3.bf16.msra.mxu0 %v1851_v11 }
 0x29b   : > { %1187 = vmatprep.subr.bf16.mxu0 %v1855_v12 }
 0x29e   : > { %1188 = vmatpush3.bf16.msra.mxu0 %v1855_v12 }
 0x2e1   : > { %v1139_v32 = vpop.f32.mrb[0].mxu1 }
 0x2e2   : > { %v523_v33 = vpop.f32.mrb[1].mxu1  ;;  %v684_v37 = vmul.f32 %v1139_v32, %v1912_v34 }
 0x2e3   : > { %v683_v40 = vmul.f32 %v523_v33, %v1914_v35 }
 0x2e4   : > { %v690_v46 = vmul.f32 %v684_v37, %v684_v37 }
 0x2e5   : > { %v689_v49 = vmul.f32 %v683_v40, %v683_v40 }
 0x2f1   : > { %v1161_v36 = vpop.f32.mrb[2].mxu1 }
 0x2f2   : > { %v686_v38 = vmul.f32 %v1161_v36, %v1912_v34  ;;  %v623_v39 = vpop.f32.mrb[3].mxu1 }
 0x2f3   : > { %v685_v41 = vmul.f32 %v623_v39, %v1914_v35 }
 0x2f4   : > { %v696_v42 = vmul.f32 %v686_v38, %v684_v37 }
 0x2f5   : > { %v695_v43 = vmul.f32 %v685_v41, %v683_v40 }
 0x354   : > { %v1150_v44 = vpop.f32.mrb[4].mxu0 }
 0x355   : > { %v688_v45 = vmul.f32 %v1150_v44, %v1912_v34  ;;  %v574_v47 = vpop.f32.mrb[5].mxu0 }
 0x356   : > { %v687_v48 = vmul.f32 %v574_v47, %v1914_v35 }
 0x357   : > { %v692_v50 = vsub.f32 %v688_v45, %v690_v46 }
 0x358   : > { %v691_v51 = vsub.f32 %v687_v48, %v689_v49 }
 0x359   : > { %v700_v52 = vadd.f32 1e-08, %v692_v50 }
 0x35a   : > { %v699_v53 = vadd.f32 1e-08, %v691_v51 }
 0x35b   : > { %1308 = vrcp.f32 %v700_v52 }
 0x35c   : > { %1310 = vrcp.f32 %v699_v53 }
 0x364   : > { %v1172_v54 = vpop.f32.mrb[6].mxu0 }
 0x365   : > { %v694_v56 = vmul.f32 %v1172_v54, %v1912_v34  ;;  %v674_v57 = vpop.f32.mrb[7].mxu0  ;;  %v1309_v60 = vpop.eup %1308 }
 0x366   : > { %v693_v58 = vmul.f32 %v674_v57, %v1914_v35  ;;  %v1311_v62 = vpop.eup %1310 }
 0x367   : > { %v698_v59 = vsub.f32 %v694_v56, %v696_v42 }
 0x368   : > { %v697_v61 = vsub.f32 %v693_v58, %v695_v43 }
 0x369   : > { %v704_v63 = vmul.f32 %v1309_v60, %v698_v59 }
 0x36a   : > { %v702_v1 = vmul.f32 %v1311_v62, %v697_v61 }
 0x36b   : > { %710 = vst.msk [vmem:[#allocation2 + $0x10] sm:$0xff] %vm341_vm0, %v704_v63  ;;  %v706_v2 = vmul.f32 %v704_v63, %v684_v37 }
 0x36c   : > { %709 = vst.msk [vmem:[#allocation2] sm:$0xff] %vm341_vm0, %v702_v1  ;;  %v705_v3 = vmul.f32 %v702_v1, %v683_v40 }
 0x36d   : > { %v708_v4 = vsub.f32 %v686_v38, %v706_v2 }
 0x36e   : > { %v707_v6 = vsub.f32 %v685_v41, %v705_v3 }
 0x36f   : > { %715 = vrot.lane.b32.xlu1 %v708_v4, %s1541_s24 }
 0x370   : > { %713 = vrot.lane.b32.xlu0 %v707_v6, %s1541_s24 }
 0x3e1   : > { %v716_v8 = vpop.permute.xlu1 %715 }
 0x3e2   : > { %720 = vst.msk [vmem:[#allocation2 + $0x10] sm:$0xff] %vm354_vm1, %v716_v8  ;;  %v714_v13 = vpop.permute.xlu0 %713 }
 0x3e3   : > { %719 = vst.msk [vmem:[#allocation2] sm:$0xff] %vm354_vm1, %v714_v13 }
 0x3e9   : > { %v722_v14 = vld [vmem:[#allocation2 + $0x10] sm:$0xff] }
 0x3ea   : > { %v721_v15 = vld [vmem:[#allocation2] sm:$0xff] }
 0x3eb   : > { %v1208_v16 = vpack.c.bf16 %v722_v14, %v721_v15 }
 0x3ed   : > { %1209 = vmatpush3.bf16.msra.mxu1 %v1208_v16 }
 0x3ee   : > { %1192 = vmatprep.subr.bf16.mxu1 %v1844_v9 }
 0x3f0   : > { %1178 = vmatmul.mubr.msk.bf16.vlgmr.msra.gmra.mrb[4].mxu1 %vm380_vm2, %v1865_v23 }
 0x3f1   : > { %1193 = vmatpush3.bf16.msra.mxu1 %v1844_v9 }
 0x3f2   : > { %1194 = vmatprep.subr.bf16.mxu1 %v1846_v10 }
 0x3f5   : > { %1195 = vmatpush3.bf16.msra.mxu1 %v1846_v10 }
 0x3f6   : > { %1196 = vmatprep.subr.bf16.mxu1 %v1851_v11 }
 0x3f9   : > { %1197 = vmatpush3.bf16.msra.mxu1 %v1851_v11 }
 0x3fa   : > { %1198 = vmatprep.subr.bf16.mxu1 %v1855_v12 }
 0x3fd   : > { %1199 = vmatpush3.bf16.msra.mxu1 %v1855_v12 }
 0x4c3   : > { %v789_v17 = vpop.f32.mrb[4].mxu1 }
 0x4c4   : > { %v1179_v18 = vpop.f32.mrb[5].mxu1  ;;  %845 = vrot.lane.b32.xlu0 %v789_v17, %s1541_s24  ;;  %1189 = vmatprep.mubr.msk.f32.mxu0 %vm341_vm0, %v789_v17 }
 0x4c5   : > { %v792_v9 = vpop.f32.mrb[6].mxu1 }
 0x4c6   : > { %847 = vrot.lane.b32.xlu1 %v792_v9, %s1541_s24  ;;  %v1180_v10 = vpop.f32.mrb[7].mxu1  ;;  %1190 = vmatmul.mubr.msk.f32.vlgmr.msra.gmra.mrb[8].mxu0 %vm341_vm0, %v792_v9 }
 0x536   : > { %v846_v19 = vpop.permute.xlu0 %845 }
 0x537   : > { %1200 = vmatprep.mubr.msk.f32.mxu1 %vm341_vm0, %v846_v19 }
 0x538   : > { %v848_v11 = vpop.permute.xlu1 %847 }
 0x539   : > { %1201 = vmatmul.mubr.msk.f32.vlgmr.msra.gmra.mrb[8].mxu1 %vm341_vm0, %v848_v11 }
 0x599   : > { %v1191_v12 = vpop.f32.mrb[8].mxu0 }
 0x59a   : > { %v836_v20 = vpop.f32.mrb[9].mxu0  ;;  %v897_v21 = vmul.f32 %v1191_v12, %v1912_v34 }
 0x59b   : > { %v896_v22 = vmul.f32 %v836_v20, %v1914_v35 }
 0x59c   : > { %v899_v24 = vmul.f32 %v897_v21, %v1833_v5 }
 0x59d   : > { %v898_v27 = vmul.f32 %v896_v22, %v1823_v0 }
 0x60c   : > { %v1202_v23 = vpop.f32.mrb[8].mxu1 }
 0x60d   : > { %v901_v25 = vmul.f32 %v1202_v23, %v1912_v34  ;;  %v887_v26 = vpop.f32.mrb[9].mxu1 }
 0x60e   : > { %v900_v28 = vmul.f32 %v887_v26, %v1914_v35 }
 0x60f   : > { %v903_v29 = vadd.f32 %v901_v25, %v899_v24 }
 0x610   : > { %v902_v30 = vadd.f32 %v900_v28, %v898_v27 }
 0x611   : > { %905 = vst.msk [vmem:[%s323_s21 + $0x8] sm:$0xff] %vm341_vm0, %v903_v29 }
 0x612   : > { %904 = vst.msk [vmem:[%s323_s21] sm:$0xff] %vm341_vm0, %v902_v30 }
 0x613   : > { %1469 = shalt.err (!%p1466_p8)
}
 0x614   : > { %s1470_s1 = scalar_lea.hbm %s1957_s13, 256  ;;  %s1474_s14 = scalar_lea.hbm %s2012_s5, 512 }
 0x615   : > { %p1471_p0 = scmp.ne.s32.totalorder %s1957_s13, %s1470_s1  ;;  %p1475_p7 = scmp.lt.u32.totalorder %s1957_s13, %s2012_s5 }
 0x616   : > { %p1476_p1 = scmp.lt.u32.totalorder %s1474_s14, %s1470_s1  ;;  %p1478_p11 = scmp.lt.u32.totalorder %s1470_s1, %s1957_s13 }
 0x617   : > { %p1472_p12 = pnand %p1471_p0, %p2059_p2 }
 0x618   : > { %p1477_p9 = por %p1476_p1, %p1475_p7 }
 0x619   : > { %p1473_p3 = pneg %p1472_p12 }
 0x61a   : > { %p1479_p4 = por %p1478_p11, %p1477_p9 }
 0x61c   : > { %p1480_p13 = pnand %p1479_p4, %p1473_p3 }
 0x61e   : > { %1483 = shalt.err (!%p1480_p13)
}
 0x61f   : > { %s1547_s23 = smov 128   ;;  %s1548_s26 = smov 8  }
 0x620   : > { %1226 = dma.vmem_to_hbm [thread:$0]  (%p2059_p2), %s1959_s12, 256, %s1957_s13, %s1965_s22, %s1547_s23, %s1547_s23, %s1548_s26  }
 0x621 PF: > { %s2060_s27 = sld [smem:[#allocation18_spill]]  ;;  %s935_s30 = sand.u32 1, %s1518_s18  }
 0x622   : > { %p2061_p5 = scmp.ne.s32.totalorder %s2035_s25, 0  ;;  %s936_s6 = scalar_lea.sflag [#allocation5], %s935_s30 }
 0x627   : > { %p2062_p10 = scmp.ge.s32.totalorder %s2060_s27, 2 }
 0x629   : > { %p1246_p6 = pnand %p2062_p10, %p2061_p5 }
 0x62b   : > { %1513 = dma.done.wait (!%p1246_p6), %s936_s6, 256  }
 0x62c   : > { %1515 = vsyncadd (!%p1246_p6), %s936_s6, 4294967040  ;;  %s2063_s21 = sld [smem:[#allocation19_spill]]  ;;  %s2064_s24 = sld [smem:[#allocation17_spill]] }
 0x62d   : > { %s2065_s20 = sld [smem:[#allocation20_spill]]  ;;  %s2066_s18 = smov %s1522_s19 }
 0x632   : > { %p20_p8 = scmp.ge.s32.totalorder %s2063_s21, 4   ;;  %s2067_s19 = smov %s2064_s24 }
 0x634   :  { %22 = sbr.rel (!%p20_p8) target bundleno = 10 (0xa), region = 109 }
 0x63b   :  { %941 = vsyncpa [#allocation4], 1 }
 0x63c   :  { %943 = vsyncpa [#allocation4 + $0x1], 1 }
 0x63d   :  { %944 = vsyncpa [#allocation7], 1 }
 0x63e   :  { %945 = vsyncpa [#allocation10], 1 }
 0x63f   :  { %947 = vsyncpa [#allocation10 + $0x1], 1 }
 0x640   :  { %948 = vsyncpa [#allocation5], 1 }
 0x641   :  { %950 = vsyncpa [#allocation5 + $0x1], 1 }

</bundles_post_ra>
